<compile_context>
chip_gen: v7x
topology: tpu7x:2x2x1
jax: 0.10.0
libtpu: 0.0.40
codegen_flags: <defaults>
</compile_context>

<pallas_src>
import jax
import jax.numpy as jnp
from jax.experimental import pallas as pl
from jax.experimental.pallas import tpu as pltpu

_EPS = 1e-6  # same eps as torch F.pairwise_distance


def _ranking_loss_kernel(margin_ref, fa_ref, f1_ref, f2_ref, f3_ref, w_ref, out_ref):
    B = fa_ref.shape[0]

    fa = fa_ref[...]
    # Feature-space deltas in f32 on the VPU (bf16 elementwise gains nothing and
    # costs relayout, esp. on v5e).
    df1 = fa - f1_ref[...]
    df2 = fa - f2_ref[...]
    df3 = fa - f3_ref[...]

    w = w_ref[...]  # bf16 [H, D], resident in VMEM

    def dist(df):
        # Linearity of the embedding head: (fa - fk) @ W == ea - ek.
        # bf16 operands, f32 accumulation on the MXU.
        e = jnp.dot(df.astype(jnp.bfloat16), w, preferred_element_type=jnp.float32)
        e = e + _EPS  # eps on the post-matmul embedding delta (pairwise_distance)
        # TODO(synk): clamp the squared sum before sqrt if a backward kernel is
        # ever added (sqrt(0) has a NaN gradient); forward is fine as-is.
        return jnp.sqrt(jnp.sum(e * e, axis=-1, keepdims=True))  # [B, 1] f32

    d1 = dist(df1)
    d2 = dist(df2)
    d3 = dist(df3)

    m = margin_ref[0, 0]
    # Fused relu-mean terms: one per-row add of the three relu'd diffs, one
    # reduction, one divide by B (each term's mean divides by B, so the fused
    # sum is divided by B, NOT 3B).  No lane-sparse [3B,1] temporary.
    terms = (
        jnp.maximum(d1 - d2 + m, 0.0)
        + jnp.maximum(d1 - d3 + m, 0.0)
        + jnp.maximum(d2 - d3 + m, 0.0)
    )  # [B, 1] f32
    out_ref[0, 0] = jnp.sum(terms) * (1.0 / float(B))


def custom_ranking_loss(feat_anchor, feat_ex1, feat_ex2, feat_ex3, w_bf16, margin=0.0):
    """Scalar ranking loss; all forward compute happens inside the single kernel.

    feat_*: [B, H] float32.  w_bf16: [H, D] bfloat16 (pre-cast ONCE at init so the
    per-call wrapper launches nothing besides the pallas_call itself).
    """
    margin_arr = jnp.full((1, 1), margin, dtype=jnp.float32)  # SMEM scalar

    out = pl.pallas_call(
        _ranking_loss_kernel,
        out_shape=jax.ShapeDtypeStruct((1, 1), jnp.float32),
        in_specs=[
            pl.BlockSpec(memory_space=pltpu.MemorySpace.SMEM),  # margin (1,1)
            pl.BlockSpec(memory_space=pltpu.MemorySpace.VMEM),  # anchor feats
            pl.BlockSpec(memory_space=pltpu.MemorySpace.VMEM),  # example-1 feats
            pl.BlockSpec(memory_space=pltpu.MemorySpace.VMEM),  # example-2 feats
            pl.BlockSpec(memory_space=pltpu.MemorySpace.VMEM),  # example-3 feats
            pl.BlockSpec(memory_space=pltpu.MemorySpace.VMEM),  # W (bf16)
        ],
        out_specs=pl.BlockSpec(memory_space=pltpu.MemorySpace.SMEM),
    )(margin_arr, feat_anchor, feat_ex1, feat_ex2, feat_ex3, w_bf16)
    return out[0, 0]


def _reference_loss(fa, f1, f2, f3, w, margin=0.0):
    # Straight f32 transcription of the PyTorch module (4 matmuls, per-pair distance).
    ea, e1, e2, e3 = (
        x.astype(jnp.float32) @ w.astype(jnp.float32) for x in (fa, f1, f2, f3)
    )

    def euclidean(x, y):
        return jnp.sqrt(jnp.sum((x - y + _EPS) ** 2, axis=-1))

    d1, d2, d3 = euclidean(ea, e1), euclidean(ea, e2), euclidean(ea, e3)
    return (
        jnp.mean(jax.nn.relu(d1 - d2 + margin))
        + jnp.mean(jax.nn.relu(d1 - d3 + margin))
        + jnp.mean(jax.nn.relu(d2 - d3 + margin))
    )


if __name__ == "__main__":
    # Lane-dense toy shapes: H = D = 128 (full 128-lane vregs / MXU width),
    # B = 8 rows (one f32 sublane tile).  Whole problem is a few KiB -> gridless.
    B, H, D = 8, 128, 128
    margin = 0.0

    key = jax.random.PRNGKey(0)
    k_a, k_1, k_2, k_3, k_w = jax.random.split(key, 5)

    feat_anchor = jax.random.normal(k_a, (B, H), dtype=jnp.float32)
    feat_ex1 = jax.random.normal(k_1, (B, H), dtype=jnp.float32)
    feat_ex2 = jax.random.normal(k_2, (B, H), dtype=jnp.float32)
    feat_ex3 = jax.random.normal(k_3, (B, H), dtype=jnp.float32)
    # deterministic "model" weights (linear embedding head H -> D)
    w = jax.random.normal(k_w, (H, D), dtype=jnp.float32) * (1.0 / jnp.sqrt(H))
    w_bf16 = w.astype(jnp.bfloat16)  # cast ONCE at init; MXU is bf16-native

    loss = custom_ranking_loss(feat_anchor, feat_ex1, feat_ex2, feat_ex3, w_bf16, margin)
    loss = jax.block_until_ready(loss)

    ref = jax.block_until_ready(
        _reference_loss(feat_anchor, feat_ex1, feat_ex2, feat_ex3, w, margin)
    )
    # bf16 MXU operands + delta-space reassociation vs. the f32 reference:
    # expected absolute deviation O(1e-2) on a loss of O(1); documented tolerance.
    assert jnp.allclose(loss, ref, rtol=2e-2, atol=5e-2), (loss, ref)

    print("KERNEL_OK")
</pallas_src>

<mosaic_0001>
module attributes {stable_mosaic.version = 11 : i64} {
  func.func @_ranking_loss_kernel(%arg0: memref<1x1xf32, #tpu.memory_space<smem>>, %arg1: memref<8x128xf32, #tpu.memory_space<vmem>>, %arg2: memref<8x128xf32, #tpu.memory_space<vmem>>, %arg3: memref<8x128xf32, #tpu.memory_space<vmem>>, %arg4: memref<8x128xf32, #tpu.memory_space<vmem>>, %arg5: memref<128x128xbf16, #tpu.memory_space<vmem>>, %arg6: memref<1x1xf32, #tpu.memory_space<smem>>) attributes {dimension_semantics = [], scalar_prefetch = 0 : i64, scratch_operands = 0 : i64, tpu.core_type = #tpu.core_type<tc>} {
    %c0 = arith.constant 0 : index
    %c0_0 = arith.constant 0 : index
    %0 = vector.load %arg1[%c0, %c0_0] : memref<8x128xf32, #tpu.memory_space<vmem>>, vector<8x128xf32>
    %c0_1 = arith.constant 0 : index
    %c0_2 = arith.constant 0 : index
    %1 = vector.load %arg2[%c0_1, %c0_2] : memref<8x128xf32, #tpu.memory_space<vmem>>, vector<8x128xf32>
    %2 = arith.subf %0, %1 : vector<8x128xf32>
    %c0_3 = arith.constant 0 : index
    %c0_4 = arith.constant 0 : index
    %3 = vector.load %arg3[%c0_3, %c0_4] : memref<8x128xf32, #tpu.memory_space<vmem>>, vector<8x128xf32>
    %4 = arith.subf %0, %3 : vector<8x128xf32>
    %c0_5 = arith.constant 0 : index
    %c0_6 = arith.constant 0 : index
    %5 = vector.load %arg4[%c0_5, %c0_6] : memref<8x128xf32, #tpu.memory_space<vmem>>, vector<8x128xf32>
    %6 = arith.subf %0, %5 : vector<8x128xf32>
    %c0_7 = arith.constant 0 : index
    %c0_8 = arith.constant 0 : index
    %7 = vector.load %arg5[%c0_7, %c0_8] : memref<128x128xbf16, #tpu.memory_space<vmem>>, vector<128x128xbf16>
    %8 = arith.truncf %2 : vector<8x128xf32> to vector<8x128xbf16>
    %cst = arith.constant dense<0.000000e+00> : vector<8x128xf32>
    %9 = tpu.matmul %8, %7, %cst {dimension_numbers = #tpu.dot_dimension_numbers<[1], [0], [0], [1], [0, 0, 1, 1], [], []>} : vector<8x128xbf16>, vector<128x128xbf16>, vector<8x128xf32> -> vector<8x128xf32>
    %cst_9 = arith.constant 9.99999997E-7 : f32
    %10 = vector.broadcast %cst_9 : f32 to vector<8x128xf32>
    %11 = arith.addf %9, %10 : vector<8x128xf32>
    %12 = arith.mulf %11, %11 : vector<8x128xf32>
    %cst_10 = arith.constant dense<0.000000e+00> : vector<8xf32>
    %13 = vector.multi_reduction <add>, %12, %cst_10 [1] : vector<8x128xf32> to vector<8xf32>
    %14 = vector.shape_cast %13 : vector<8xf32> to vector<8x1xf32>
    %15 = math.sqrt %14 : vector<8x1xf32>
    %16 = arith.truncf %4 : vector<8x128xf32> to vector<8x128xbf16>
    %cst_11 = arith.constant dense<0.000000e+00> : vector<8x128xf32>
    %17 = tpu.matmul %16, %7, %cst_11 {dimension_numbers = #tpu.dot_dimension_numbers<[1], [0], [0], [1], [0, 0, 1, 1], [], []>} : vector<8x128xbf16>, vector<128x128xbf16>, vector<8x128xf32> -> vector<8x128xf32>
    %cst_12 = arith.constant 9.99999997E-7 : f32
    %18 = vector.broadcast %cst_12 : f32 to vector<8x128xf32>
    %19 = arith.addf %17, %18 : vector<8x128xf32>
    %20 = arith.mulf %19, %19 : vector<8x128xf32>
    %cst_13 = arith.constant dense<0.000000e+00> : vector<8xf32>
    %21 = vector.multi_reduction <add>, %20, %cst_13 [1] : vector<8x128xf32> to vector<8xf32>
    %22 = vector.shape_cast %21 : vector<8xf32> to vector<8x1xf32>
    %23 = math.sqrt %22 : vector<8x1xf32>
    %24 = arith.truncf %6 : vector<8x128xf32> to vector<8x128xbf16>
    %cst_14 = arith.constant dense<0.000000e+00> : vector<8x128xf32>
    %25 = tpu.matmul %24, %7, %cst_14 {dimension_numbers = #tpu.dot_dimension_numbers<[1], [0], [0], [1], [0, 0, 1, 1], [], []>} : vector<8x128xbf16>, vector<128x128xbf16>, vector<8x128xf32> -> vector<8x128xf32>
    %cst_15 = arith.constant 9.99999997E-7 : f32
    %26 = vector.broadcast %cst_15 : f32 to vector<8x128xf32>
    %27 = arith.addf %25, %26 : vector<8x128xf32>
    %28 = arith.mulf %27, %27 : vector<8x128xf32>
    %cst_16 = arith.constant dense<0.000000e+00> : vector<8xf32>
    %29 = vector.multi_reduction <add>, %28, %cst_16 [1] : vector<8x128xf32> to vector<8xf32>
    %30 = vector.shape_cast %29 : vector<8xf32> to vector<8x1xf32>
    %31 = math.sqrt %30 : vector<8x1xf32>
    %c0_17 = arith.constant 0 : index
    %c0_18 = arith.constant 0 : index
    %32 = memref.load %arg0[%c0_17, %c0_18] : memref<1x1xf32, #tpu.memory_space<smem>>
    %33 = arith.subf %15, %23 : vector<8x1xf32>
    %34 = vector.broadcast %32 : f32 to vector<8x1xf32>
    %35 = arith.addf %33, %34 : vector<8x1xf32>
    %cst_19 = arith.constant 0.000000e+00 : f32
    %36 = vector.broadcast %cst_19 : f32 to vector<8x1xf32>
    %37 = arith.maximumf %35, %36 : vector<8x1xf32>
    %38 = arith.subf %15, %31 : vector<8x1xf32>
    %39 = vector.broadcast %32 : f32 to vector<8x1xf32>
    %40 = arith.addf %38, %39 : vector<8x1xf32>
    %cst_20 = arith.constant 0.000000e+00 : f32
    %41 = vector.broadcast %cst_20 : f32 to vector<8x1xf32>
    %42 = arith.maximumf %40, %41 : vector<8x1xf32>
    %43 = arith.addf %37, %42 : vector<8x1xf32>
    %44 = arith.subf %23, %31 : vector<8x1xf32>
    %45 = vector.broadcast %32 : f32 to vector<8x1xf32>
    %46 = arith.addf %44, %45 : vector<8x1xf32>
    %cst_21 = arith.constant 0.000000e+00 : f32
    %47 = vector.broadcast %cst_21 : f32 to vector<8x1xf32>
    %48 = arith.maximumf %46, %47 : vector<8x1xf32>
    %49 = arith.addf %43, %48 : vector<8x1xf32>
    %50 = vector.shape_cast %49 : vector<8x1xf32> to vector<1x8x1xf32>
    %cst_22 = arith.constant dense<0.000000e+00> : vector<1xf32>
    %51 = vector.multi_reduction <add>, %50, %cst_22 [1, 2] : vector<1x8x1xf32> to vector<1xf32>
    %52 = vector.shape_cast %51 : vector<1xf32> to vector<1x1x1xf32>
    %53 = vector.extract %52[0, 0, 0] : f32 from vector<1x1x1xf32>
    %cst_23 = arith.constant 1.250000e-01 : f32
    %54 = arith.mulf %53, %cst_23 : f32
    %c0_24 = arith.constant 0 : index
    %c0_25 = arith.constant 0 : index
    %55 = memref.load %arg6[%c0_24, %c0_25] : memref<1x1xf32, #tpu.memory_space<smem>>
    memref.store %54, %arg6[%c0_24, %c0_25] : memref<1x1xf32, #tpu.memory_space<smem>>
    return
  }
}

</mosaic_0001>

<bundles_post_ra>
// kernel: tpu_custom_call.1
= control target key start
LH: loop header
LB: loop body
LE: loop exit
PB: predicated region body
PF: predicated region fallthrough
CT: control target
= control target key end

     0   :  { %12 = vsyncpa [#allocation4], 0  ;;  %s715_s0 = inlined_call_operand.<no memory space> [shape: f32[1,1], index: 0, kind: input, shape index: {}]   ;;  %s716_s1 = inlined_call_operand.hbm [shape: f32[8,128], index: 1, kind: input, shape index: {}]   ;;  %s717_s2 = inlined_call_operand.hbm [shape: f32[8,128], index: 2, kind: input, shape index: {}]   ;;  %s718_s3 = inlined_call_operand.vmem [shape: f32[8,128], index: 3, kind: input, shape index: {}]   ;;  %s719_s4 = inlined_call_operand.hbm [shape: f32[8,128], index: 4, kind: input, shape index: {}]   ;;  %s720_s5 = inlined_call_operand.hbm [shape: bf16[128,128], index: 5, kind: input, shape index: {}]   ;;  %s721_s6 = inlined_call_operand.hbm [shape: f32[1,1], index: 6, kind: output, shape index: {}]  }
   0x1   :  { %13 = vsyncpa [#allocation7], 0 }
   0x2   :  { %14 = vsyncpa [#allocation10], 0 }
   0x3   :  { %15 = vsyncpa [#allocation5], 0  ;;  %s568_s21 = smov [#allocation6]   ;;  %s569_s23 = smov [#allocation3]  }
   0x4   :  { %s34_s22 = sshll.u32 %s568_s21, 4  ;;  %s24_s24 = sshll.u32 %s569_s23, 4  ;;  %s35_s22 = int_to_ptr.vmem [resolvable:$true] %s34_s22  ;;  %s25_s24 = int_to_ptr.vmem [resolvable:$true] %s24_s24 }
   0x5   :  { %s462_s27 = scalar_lea.hbm %s717_s2, 128 }
   0x6   :  { %p463_p0 = scmp.ne.s32.totalorder %s717_s2, %s462_s27  ;;  %p466_p1 = scmp.lt.u32.totalorder %s462_s27, %s717_s2 }
   0x8   :  { %p468_p2 = pnand %p466_p1, %p463_p0 }
   0xa   :  { %471 = shalt.err (!%p468_p2)
}
   0xb   :  { %s472_s8 = scalar_lea.vmem %s35_s22, 128  ;;  %p477_p4 = scmp.lt.s32.totalorder %s35_s22, %s35_s22 }
   0xc   :  { %p473_p3 = scmp.ne.s32.totalorder %s35_s22, %s472_s8  ;;  %p478_p5 = scmp.lt.s32.totalorder %s472_s8, %s472_s8 }
   0xe   :  { %p479_p6 = por %p478_p5, %p477_p4 }
  0x10   :  { %p480_p7 = pnand %p479_p6, %p473_p3 }
  0x12   :  { %483 = shalt.err (!%p480_p7)
}
  0x13   :  { %37 = dma.hbm_to_vmem [thread:$0]  %s717_s2, 128, %s35_s22, [#allocation7]  }
  0x14   :  { %s484_s13 = scalar_lea.hbm %s716_s1, 128 }
  0x15   :  { %p485_p8 = scmp.ne.s32.totalorder %s716_s1, %s484_s13  ;;  %p488_p9 = scmp.lt.u32.totalorder %s484_s13, %s716_s1 }
  0x17   :  { %p490_p10 = pnand %p488_p9, %p485_p8 }
  0x19   :  { %493 = shalt.err (!%p490_p10)
}
  0x1a   :  { %s494_s18 = scalar_lea.vmem %s25_s24, 128  ;;  %p499_p12 = scmp.lt.s32.totalorder %s25_s24, %s25_s24 }
  0x1b   :  { %p495_p11 = scmp.ne.s32.totalorder %s25_s24, %s494_s18  ;;  %p500_p13 = scmp.lt.s32.totalorder %s494_s18, %s494_s18 }
  0x1d   :  { %p501_p0 = por %p500_p13, %p499_p12 }
  0x1f   :  { %p502_p1 = pnand %p501_p0, %p495_p11 }
  0x21   :  { %505 = shalt.err (!%p502_p1)
}
  0x22   :  { %27 = dma.hbm_to_vmem [thread:$0]  %s716_s1, 128, %s25_s24, [#allocation4]  }
  0x23   :  { %s570_s20 = smov [#allocation8]   ;;  %s571_s22 = smov [#allocation9]  }
  0x24   :  { %s46_s21 = sshll.u32 %s570_s20, 4  ;;  %s55_s23 = sshll.u32 %s571_s22, 4  ;;  %s47_s21 = int_to_ptr.vmem [resolvable:$true] %s46_s21  ;;  %s636_s23 = int_to_ptr.vmem [resolvable:$true] %s55_s23 }
  0x25   :  { %s506_s27 = scalar_lea.hbm %s719_s4, 128 }
  0x26   :  { %p507_p2 = scmp.ne.s32.totalorder %s719_s4, %s506_s27  ;;  %p510_p3 = scmp.lt.u32.totalorder %s506_s27, %s719_s4 }
  0x28   :  { %p512_p4 = pnand %p510_p3, %p507_p2 }
  0x2a   :  { %515 = shalt.err (!%p512_p4)
}
  0x2b   :  { %s516_s1 = scalar_lea.vmem %s47_s21, 128  ;;  %p521_p6 = scmp.lt.s32.totalorder %s47_s21, %s47_s21 }
  0x2c   :  { %p517_p5 = scmp.ne.s32.totalorder %s47_s21, %s516_s1  ;;  %p522_p7 = scmp.lt.s32.totalorder %s516_s1, %s516_s1 }
  0x2e   :  { %p523_p8 = por %p522_p7, %p521_p6 }
  0x30   :  { %p524_p9 = pnand %p523_p8, %p517_p5 }
  0x32   :  { %527 = shalt.err (!%p524_p9)
}
  0x33   :  { %49 = dma.hbm_to_vmem [thread:$0]  %s719_s4, 128, %s47_s21, [#allocation7]  }
  0x34   :  { %s528_s11 = scalar_lea.hbm %s720_s5, 1024 }
  0x35   :  { %p529_p10 = scmp.ne.s32.totalorder %s720_s5, %s528_s11  ;;  %p532_p11 = scmp.lt.u32.totalorder %s528_s11, %s720_s5 }
  0x37   :  { %p534_p12 = pnand %p532_p11, %p529_p10 }
  0x39   :  { %537 = shalt.err (!%p534_p12)
}
  0x3a   :  { %s538_s16 = scalar_lea.vmem %s636_s23, 1024  ;;  %p543_p0 = scmp.lt.s32.totalorder %s636_s23, %s636_s23 }
  0x3b   :  { %p539_p13 = scmp.ne.s32.totalorder %s636_s23, %s538_s16  ;;  %p544_p1 = scmp.lt.s32.totalorder %s538_s16, %s538_s16 }
  0x3d   :  { %p545_p2 = por %p544_p1, %p543_p0 }
  0x3f   :  { %p546_p3 = pnand %p545_p2, %p539_p13 }
  0x41   :  { %549 = shalt.err (!%p546_p3)
}
  0x42   :  { %s572_s4 = smov 64   ;;  %s573_s17 = smov 4  }
  0x43   :  { %61 = dma.hbm_to_vmem [thread:$0]  %s720_s5, 1024, %s636_s23, [#allocation10], %s572_s4, %s572_s4, %s573_s17  }
  0x44   :  { %560 = dma.done.wait [#allocation4], 128  }
  0x45   :  { %561 = vsyncadd [#allocation4], 4294967168 }
  0x46   :  { %562 = dma.done.wait [#allocation7], 256  }
  0x47   :  { %563 = vsyncadd [#allocation7], 4294967040 }
  0x48   :  { %564 = dma.done.wait [#allocation10], 1024  }
  0x49   :  { %565 = vsyncadd [#allocation10], 4294966272  ;;  %v574_v0 = vmov 0.0   ;;  %vm575_vm0 = vmmov 0   ;;  %v448_v1 = vld [vmem:[#allocation9] sm:$0xff]   ;;  %v449_v2 = vld [vmem:[#allocation9 + $0x8] sm:$0xff]   ;;  %v301_v54 = vstv %s715_s0 }
  0x4a   :  { %377 = vmatprep.subr.bf16.mxu0 %v574_v0  ;;  %397 = vmatprep.subr.bf16.mxu1 %v574_v0  ;;  %v450_v3 = vld [vmem:[#allocation9 + $0x10] sm:$0xff]   ;;  %v451_v4 = vld [vmem:[#allocation9 + $0x18] sm:$0xff]   ;;  %v452_v5 = vld [vmem:[#allocation9 + $0x20] sm:$0xff]   ;;  %vm312_vm7 = vcmask 7168   ;;  %s550_s25 = scalar_lea.hbm %s721_s6, 16 }
  0x4b   :  { %393 = vmatprep.mubr.msk.bf16.mxu0 %vm575_vm0, %v574_v0  ;;  %413 = vmatprep.mubr.msk.bf16.mxu1 %vm575_vm0, %v574_v0  ;;  %v453_v6 = vld [vmem:[#allocation9 + $0x28] sm:$0xff]   ;;  %v454_v7 = vld [vmem:[#allocation9 + $0x30] sm:$0xff]   ;;  %v455_v13 = vld [vmem:[#allocation9 + $0x38] sm:$0xff]   ;;  %p551_p4 = scmp.ne.s32.totalorder %s721_s6, %s550_s25  ;;  %p554_p5 = scmp.lt.u32.totalorder %s550_s25, %s721_s6 }
  0x4c   :  { %378 = vmatpush3.bf16.msra.mxu0 %v448_v1  ;;  %398 = vmatpush3.bf16.msra.mxu1 %v448_v1  ;;  %v75_v8 = vld [vmem:[#allocation3] sm:$0xff]  ;;  %v76_v9 = vld [vmem:[#allocation6] sm:$0xff]  ;;  %v80_v16 = vld [vmem:[#allocation8] sm:$0xff] }
  0x4d   :  { %379 = vmatprep.subr.bf16.mxu0 %v574_v0  ;;  %399 = vmatprep.subr.bf16.mxu1 %v574_v0  ;;  %v78_v10 = vld [vmem:[%s718_s3] sm:$0xff]  ;;  %v77_v11 = vsub.f32 %v75_v8, %v76_v9  ;;  %v81_v17 = vsub.f32 %v75_v8, %v80_v16  ;;  %p556_p6 = pnand %p554_p5, %p551_p4 }
  0x4e   :  { %v79_v12 = vsub.f32 %v75_v8, %v78_v10 }
  0x4f   :  { %v98_v14 = vpack.c.bf16 %v77_v11, %v77_v11  ;;  %v248_v18 = vpack.c.bf16 %v81_v17, %v81_v17 }
  0x50   :  { %380 = vmatpush3.bf16.msra.mxu0 %v449_v2  ;;  %400 = vmatpush3.bf16.msra.mxu1 %v449_v2  ;;  %v197_v15 = vpack.c.bf16 %v79_v12, %v79_v12 }
  0x51   :  { %381 = vmatprep.subr.bf16.mxu0 %v574_v0  ;;  %401 = vmatprep.subr.bf16.mxu1 %v574_v0 }
  0x54   :  { %382 = vmatpush3.bf16.msra.mxu0 %v450_v3  ;;  %402 = vmatpush3.bf16.msra.mxu1 %v450_v3 }
  0x55   :  { %383 = vmatprep.subr.bf16.mxu0 %v574_v0  ;;  %403 = vmatprep.subr.bf16.mxu1 %v574_v0 }
  0x58   :  { %384 = vmatpush3.bf16.msra.mxu0 %v451_v4  ;;  %404 = vmatpush3.bf16.msra.mxu1 %v451_v4 }
  0x59   :  { %385 = vmatprep.subr.bf16.mxu0 %v574_v0  ;;  %405 = vmatprep.subr.bf16.mxu1 %v574_v0 }
  0x5c   :  { %386 = vmatpush3.bf16.msra.mxu0 %v452_v5  ;;  %406 = vmatpush3.bf16.msra.mxu1 %v452_v5 }
  0x5d   :  { %387 = vmatprep.subr.bf16.mxu0 %v574_v0  ;;  %407 = vmatprep.subr.bf16.mxu1 %v574_v0 }
  0x60   :  { %388 = vmatpush3.bf16.msra.mxu0 %v453_v6  ;;  %408 = vmatpush3.bf16.msra.mxu1 %v453_v6 }
  0x61   :  { %389 = vmatprep.subr.bf16.mxu0 %v574_v0  ;;  %409 = vmatprep.subr.bf16.mxu1 %v574_v0 }
  0x64   :  { %390 = vmatpush3.bf16.msra.mxu0 %v454_v7  ;;  %410 = vmatpush3.bf16.msra.mxu1 %v454_v7 }
  0x65   :  { %391 = vmatprep.subr.bf16.mxu0 %v574_v0  ;;  %411 = vmatprep.subr.bf16.mxu1 %v574_v0 }
  0x68   :  { %392 = vmatpush3.bf16.msra.mxu0 %v455_v13  ;;  %412 = vmatpush3.bf16.msra.mxu1 %v455_v13 }
  0x69   :  { %417 = vmatprep.subr.bf16.mxu0 %v574_v0 }
  0x6b   :  { %394 = vmatmul.mubr.bf16.vlgmr.msra.gmra.mrb[0].mxu0 %v98_v14  ;;  %414 = vmatmul.mubr.bf16.vlgmr.msra.gmra.mrb[0].mxu1 %v197_v15 }
  0x6c   :  { %418 = vmatpush3.bf16.msra.mxu0 %v448_v1  ;;  %433 = vmatprep.mubr.msk.bf16.mxu0 %vm575_vm0, %v574_v0 }
  0x6d   :  { %419 = vmatprep.subr.bf16.mxu0 %v574_v0 }
  0x70   :  { %420 = vmatpush3.bf16.msra.mxu0 %v449_v2 }
  0x71   :  { %421 = vmatprep.subr.bf16.mxu0 %v574_v0 }
  0x74   :  { %422 = vmatpush3.bf16.msra.mxu0 %v450_v3 }
  0x75   :  { %423 = vmatprep.subr.bf16.mxu0 %v574_v0 }
  0x78   :  { %424 = vmatpush3.bf16.msra.mxu0 %v451_v4 }
  0x79   :  { %425 = vmatprep.subr.bf16.mxu0 %v574_v0 }
  0x7c   :  { %426 = vmatpush3.bf16.msra.mxu0 %v452_v5 }
  0x7d   :  { %427 = vmatprep.subr.bf16.mxu0 %v574_v0 }
  0x80   :  { %428 = vmatpush3.bf16.msra.mxu0 %v453_v6 }
  0x81   :  { %429 = vmatprep.subr.bf16.mxu0 %v574_v0 }
  0x84   :  { %430 = vmatpush3.bf16.msra.mxu0 %v454_v7 }
  0x85   :  { %431 = vmatprep.subr.bf16.mxu0 %v574_v0 }
  0x88   :  { %432 = vmatpush3.bf16.msra.mxu0 %v455_v13 }
  0x8b   :  { %434 = vmatmul.mubr.bf16.vlgmr.msra.gmra.mrb[4].mxu0 %v248_v18 }
 0x13e   :  { %v181_v19 = vpop.f32.mrb[0].mxu0  ;;  %v232_v20 = vpop.f32.mrb[0].mxu1 }
 0x13f   :  { %v395_v21 = vpop.f32.mrb[1].mxu0  ;;  %v233_v22 = vadd.f32 1e-06, %v232_v20  ;;  %v182_v23 = vadd.f32 1e-06, %v181_v19  ;;  %v415_v24 = vpop.f32.mrb[1].mxu1 }
 0x140   :  { %v184_v25 = vpop.f32.mrb[2].mxu0  ;;  %v235_v26 = vpop.f32.mrb[2].mxu1 }
 0x141   :  { %v396_v27 = vpop.f32.mrb[3].mxu0  ;;  %v187_v28 = vmul.f32 %v182_v23, %v182_v23  ;;  %v416_v29 = vpop.f32.mrb[3].mxu1  ;;  %v238_v30 = vmul.f32 %v233_v22, %v233_v22 }
 0x143   :  { %188 = vadd.xlane.f32.xlu0 %v187_v28 }
 0x147   :  { %239 = vadd.xlane.f32.xlu0 %v238_v30 }
 0x15e   :  { %v283_v31 = vpop.f32.mrb[4].mxu0 }
 0x15f   :  { %v435_v32 = vpop.f32.mrb[5].mxu0  ;;  %v284_v33 = vadd.f32 1e-06, %v283_v31 }
 0x160   :  { %v286_v34 = vpop.f32.mrb[6].mxu0 }
 0x161   :  { %v436_v35 = vpop.f32.mrb[7].mxu0  ;;  %v289_v36 = vmul.f32 %v284_v33, %v284_v33 }
 0x163   :  { %290 = vadd.xlane.f32.xlu1 %v289_v36 }
 0x1d0   :  { %v189_v37 = vpop.xlane.xlu0 %188 }
 0x1d1   :  { %vm192_vm3 = vcmp.eq.f32.partialorder %v189_v37, inf  ;;  %v195_v47 = vand.u32 2147483648, %v189_v37  ;;  %vm194_vm4 = vcmp.eq.f32.partialorder %v189_v37, 0.0 }
 0x1d4   :  { %v240_v38 = vpop.xlane.xlu0 %239 }
 0x1d5   :  { %456 = vrsqrt.f32 %v240_v38  ;;  %vm243_vm1 = vcmp.eq.f32.partialorder %v240_v38, inf  ;;  %v246_v44 = vand.u32 2147483648, %v240_v38  ;;  %vm245_vm2 = vcmp.eq.f32.partialorder %v240_v38, 0.0 }
 0x1d6   :  { %458 = vrsqrt.f32 %v189_v37 }
 0x1df   :  { %v457_v39 = vpop.eup %456 }
 0x1e0   :  { %v459_v41 = vpop.eup %458  ;;  %v242_v42 = vmul.f32 %v457_v39, %v240_v38 }
 0x1e1   :  { %v191_v43 = vmul.f32 %v459_v41, %v189_v37 }
 0x1e2   :  { %v244_v45 = vsel %vm243_vm1, %v240_v38, %v242_v42 }
 0x1e3   :  { %v193_v46 = vsel %vm192_vm3, %v189_v37, %v191_v43  ;;  %v247_v48 = vsel %vm245_vm2, %v246_v44, %v244_v45 }
 0x1e4   :  { %v196_v50 = vsel %vm194_vm4, %v195_v47, %v193_v46 }
 0x1e5   :  { %v300_v52 = vsub.f32 %v196_v50, %v247_v48 }
 0x1e7   :  { %v302_v57 = vadd.f32 %v301_v54, %v300_v52 }
 0x1e9   :  { %v303_v62 = vmax.f32 %v302_v57, 0.0 }
 0x1f0   :  { %v291_v40 = vpop.xlane.xlu1 %290 }
 0x1f1   :  { %460 = vrsqrt.f32 %v291_v40  ;;  %vm294_vm5 = vcmp.eq.f32.partialorder %v291_v40, inf  ;;  %v297_v53 = vand.u32 2147483648, %v291_v40  ;;  %vm296_vm6 = vcmp.eq.f32.partialorder %v291_v40, 0.0 }
 0x1fb   :  { %v461_v49 = vpop.eup %460 }
 0x1fc   :  { %v293_v51 = vmul.f32 %v461_v49, %v291_v40 }
 0x1fe   :  { %v295_v55 = vsel %vm294_vm5, %v291_v40, %v293_v51 }
 0x1ff   :  { %v298_v56 = vsel %vm296_vm6, %v297_v53, %v295_v55 }
 0x200   :  { %v304_v58 = vsub.f32 %v196_v50, %v298_v56  ;;  %v308_v59 = vsub.f32 %v247_v48, %v298_v56 }
 0x202   :  { %v305_v60 = vadd.f32 %v304_v58, %v301_v54  ;;  %v309_v61 = vadd.f32 %v308_v59, %v301_v54 }
 0x204   :  { %v306_v63 = vmax.f32 %v305_v60, 0.0  ;;  %v310_v1 = vmax.f32 %v309_v61, 0.0 }
 0x206   :  { %v307_v0 = vadd.f32 %v306_v63, %v303_v62 }
 0x208   :  { %v311_v2 = vadd.f32 %v310_v1, %v307_v0 }
 0x20a   :  { %v313_v3 = vsel %vm312_vm7, %v311_v2, 0.0 }
 0x20b   :  { %314 = vadd.xlane.f32.xlu1 %v313_v3 }
 0x298   :  { %v315_v4 = vpop.xlane.xlu1 %314 }
 0x299   :  { %v316_v5 = vrot.slane %v315_v4, 4 }
 0x29b   :  { %v317_v6 = vadd.f32 %v316_v5, %v315_v4 }
 0x29d   :  { %v318_v7 = vrot.slane %v317_v6, 2 }
 0x29f   :  { %v319_v8 = vadd.f32 %v318_v7, %v317_v6 }
 0x2a1   :  { %v320_v9 = vrot.slane %v319_v8, 1 }
 0x2a3   :  { %v321_v10 = vadd.f32 %v320_v9, %v319_v8 }
 0x2a5   :  { %437 = vpush %v321_v10 }
 0x2d6   :  { %s438_s0 = spop %437 }
 0x2d7   :  { %s323_s21 = smul.f32 0.125, %s438_s0 }
 0x2d9   :  { %325 = sst [smem:[#allocation11]] %s323_s21 }
 0x2da   :  { %559 = shalt.err (!%p556_p6)
}
 0x2db   :  { %s576_s30 = smov [#allocation11]  }
 0x2dc   :  { %333 = dma.smem_to_hbm %s576_s30, 16, %s721_s6, [#allocation5]  }
 0x2dd   :  { %566 = dma.done.wait [#allocation5], 16  }
 0x2de   :  { %567 = vsyncadd [#allocation5], 4294967280 }
 0x2df   :  { %337 = sfence }
 0x2e0   :  { %338 = vsyncpa [#allocation4], 1 }
 0x2e1   :  { %339 = vsyncpa [#allocation7], 1 }
 0x2e2   :  { %340 = vsyncpa [#allocation10], 1 }
 0x2e3   :  { %341 = vsyncpa [#allocation5], 1 }

</bundles_post_ra>
